<compile_context>
chip_gen: v7x
topology: tpu7x:2x2x1
jax: 0.10.0
libtpu: 0.0.40
codegen_flags: <defaults>
</compile_context>

<pallas_src>
import functools

import jax
import jax.numpy as jnp
from jax import lax
from jax.experimental import pallas as pl
from jax.experimental.pallas import tpu as pltpu


def _class_loss_kernel(gt_ref, pred_ref, out_ref, acc_ref, *,
                       inv_hw, tile_n, n_cols, tiles_per_split, need_mask, mask_start):
    s_idx = pl.program_id(1)   # spatial split (TC-parallel when B == 1)
    j = pl.program_id(2)       # tile index within the split (reduction axis)

    @pl.when(j == 0)
    def _():
        acc_ref[...] = jnp.zeros_like(acc_ref)

    pred = pred_ref[...].astype(jnp.float32)   # (C, tile_n): channels on sublanes
    gt = gt_ref[...].astype(jnp.float32)       # (C, tile_n)

    # Numerically-stable log-softmax pieces, reduced over the channel (sublane) axis.
    m = jnp.max(pred, axis=0, keepdims=True)                          # (1, tile_n)
    shifted = pred - m
    lse = jnp.log(jnp.sum(jnp.exp(shifted), axis=0, keepdims=True))   # (1, tile_n)

    # -sum_c(gt * (shifted - lse)) == lse * sum_c(gt) - sum_c(gt * shifted)
    gt_sum = jnp.sum(gt, axis=0, keepdims=True)                       # (1, tile_n)
    gt_dot = jnp.sum(gt * shifted, axis=0, keepdims=True)             # (1, tile_n)
    contrib = gt_sum * lse - gt_dot                                   # (1, tile_n)

    if need_mask:
        gtile = s_idx * tiles_per_split + j   # global tile index along the lane axis

        # Mask only on the tiles that actually contain columns >= N (the remainder
        # tile and any fully-out-of-range clamped tiles from the TC split); all other
        # steps pay zero masking cost.
        @pl.when(gtile < mask_start)
        def _():
            acc_ref[...] += contrib

        @pl.when(gtile >= mask_start)
        def _():
            cols = gtile * tile_n + lax.broadcasted_iota(jnp.int32, (1, tile_n), 1)
            acc_ref[...] += jnp.where(cols < n_cols, contrib, 0.0)
    else:
        acc_ref[...] += contrib

    @pl.when(j == pl.num_programs(2) - 1)
    def _():
        total = jnp.sum(acc_ref[...], axis=1, keepdims=True)          # (1, 1)
        out_ref[...] = (total * inv_hw).reshape(1, 1, 1)


def class_loss(pixel_radar_map_gt, class_pred, raw_radars, use_weighted_loss=True,
               *, tile_n=None):
    """Pallas implementation of ClassLoss.forward.

    pixel_radar_map_gt: [B, C, H, W]
    class_pred:         [B, C, H, W]
    raw_radars:         [B, T, H, W, 1]  (does not affect the returned loss)
    tile_n:             optional explicit lane tile (multiple of 128); auto-sized if None.
    """
    # power-weighting has no effect on the PyTorch forward output (computed, never used).
    del raw_radars, use_weighted_loss

    B, C, H, W = class_pred.shape
    N = H * W
    itemsize = jnp.dtype(class_pred.dtype).itemsize

    # NCHW -> (B, C, H*W): contiguous reshape (free), no transpose, no HBM pad.
    pred3 = class_pred.reshape(B, C, N)
    gt3 = pixel_radar_map_gt.reshape(B, C, N)

    # --- Lane tile auto-sizing: ~2 MiB of input bytes per grid step (2 * C * tn * item),
    #     capped so 2 inputs x 2 buffers x C x tn + f32 accumulator stays <= ~20 MiB
    #     (safe within v7x's 32 MiB default scoped VMEM).
    if tile_n is None:
        target_bytes = 2 << 20
        vmem_cap = 20 << 20
        tn = max(128, (target_bytes // (2 * C * itemsize)) // 128 * 128)
        tn_vmem = max(128, (vmem_cap // (4 * C * itemsize + 4)) // 128 * 128)
        tn = int(min(tn, tn_vmem))
    else:
        assert tile_n % 128 == 0, "tile_n must be a multiple of 128"
        tn = int(tile_n)

    if N <= tn:
        tn = N                       # full-extent lane block (allowed even if not %128)
        n_tiles = 1
    else:
        n_tiles = pl.cdiv(N, tn)

    # --- TensorCore utilization on v7x when B == 1: split the tile range into two
    #     independent "parallel" halves (harmless size-1 axis otherwise).
    n_splits = 2 if (B == 1 and n_tiles >= 2) else 1
    tiles_per_split = pl.cdiv(n_tiles, n_splits)
    scanned_tiles = n_splits * tiles_per_split
    need_mask = scanned_tiles * tn > N        # any scanned column >= N must be masked
    mask_start = N // tn                      # first global tile containing cols >= N
    last_tile = n_tiles - 1

    # Explicit VMEM limit: larger-than-default tiles must not fall back to unpipelined
    # buffers under v5e's 16 MiB default scoped limit; stay <= 64 MiB (v7x physical).
    vmem_needed = 4 * C * tn * itemsize + 4 * tn + (1 << 20)
    vmem_limit = int(min(64 << 20, max(32 << 20, vmem_needed)))

    kernel = functools.partial(
        _class_loss_kernel,
        inv_hw=1.0 / float(N),
        tile_n=tn,
        n_cols=N,
        tiles_per_split=tiles_per_split,
        need_mask=need_mask,
        mask_start=mask_start,
    )

    def in_map(b, s, j):
        # Clamp fully-out-of-range tiles (from the ceil-divided split) back onto the
        # last valid block; their contribution is zeroed by the in-kernel mask.
        return (b, 0, jnp.minimum(s * tiles_per_split + j, last_tile))

    cost = pl.CostEstimate(
        flops=10 * B * C * N,
        transcendentals=B * (C + 1) * N,
        bytes_accessed=2 * B * C * N * itemsize + B * n_splits * 4,
    )

    partials = pl.pallas_call(
        kernel,
        out_shape=jax.ShapeDtypeStruct((B, n_splits, 1), jnp.float32),
        grid_spec=pltpu.PrefetchScalarGridSpec(
            num_scalar_prefetch=0,
            grid=(B, n_splits, tiles_per_split),
            in_specs=[
                # Leading batch dim squeezed (None == pl.Squeezed()): kernel sees (C, tn).
                pl.BlockSpec((None, C, tn), in_map),
                pl.BlockSpec((None, C, tn), in_map),
            ],
            out_specs=pl.BlockSpec((1, 1, 1), lambda b, s, j: (b, s, 0)),
            scratch_shapes=[pltpu.VMEM((1, tn), jnp.float32)],
        ),
        compiler_params=pltpu.CompilerParams(
            # batch / split axes shard across TCs (v7x); reduction axis stays serial.
            dimension_semantics=("parallel", "parallel", "arbitrary"),
            vmem_limit_bytes=vmem_limit,
        ),
        cost_estimate=cost,
    )(gt3, pred3)

    # Each (b, split) partial is already scaled by 1/(H*W); their sum matches the ref.
    return jnp.sum(partials)


def _reference(pixel_radar_map_gt, class_pred, raw_radars):
    del raw_radars
    log_probs = jax.nn.log_softmax(class_pred.astype(jnp.float32), axis=1)
    loss = jnp.sum(-pixel_radar_map_gt.astype(jnp.float32) * log_probs, axis=1)
    return jnp.sum(loss) / (class_pred.shape[2] * class_pred.shape[3])


if __name__ == "__main__":
    key = jax.random.PRNGKey(0)
    k1, k2, k3, k4, k5, k6, k7 = jax.random.split(key, 7)

    # 1) Primary small test (auto tile -> single full-extent lane block, batch grid of 2).
    B, C, H, W = 2, 4, 16, 16
    class_pred = jax.random.normal(k1, (B, C, H, W), dtype=jnp.float32)
    pixel_radar_map_gt = jax.random.uniform(k2, (B, C, H, W), dtype=jnp.float32)
    raw_radars = jax.random.uniform(k3, (B, 2, H, W, 1), dtype=jnp.float32)

    loss = class_loss(pixel_radar_map_gt, class_pred, raw_radars, use_weighted_loss=True)
    loss = jax.block_until_ready(loss)
    ref = _reference(pixel_radar_map_gt, class_pred, raw_radars)
    assert jnp.allclose(loss, ref, rtol=1e-5, atol=1e-5), (loss, ref)

    # 2) Multi-tile + gated remainder-mask path (forced small tile).
    B2, C2, H2, W2 = 2, 4, 10, 30   # N = 300, tile_n = 128 -> 3 tiles, masked remainder
    cp2 = jax.random.normal(k4, (B2, C2, H2, W2), dtype=jnp.float32)
    gt2 = jax.random.uniform(k5, (B2, C2, H2, W2), dtype=jnp.float32)
    rr2 = jnp.zeros((B2, 2, H2, W2, 1), dtype=jnp.float32)
    loss2 = jax.block_until_ready(class_loss(gt2, cp2, rr2, tile_n=128))
    ref2 = _reference(gt2, cp2, rr2)
    assert jnp.allclose(loss2, ref2, rtol=1e-5, atol=1e-5), (loss2, ref2)

    # 3) B == 1 two-way TC split + clamped out-of-range tile + remainder mask.
    B3, C3, H3, W3 = 1, 4, 5, 125   # N = 625, tile_n = 128 -> 5 tiles, 2 splits of 3
    cp3 = jax.random.normal(k6, (B3, C3, H3, W3), dtype=jnp.float32)
    gt3 = jax.random.uniform(k7, (B3, C3, H3, W3), dtype=jnp.float32)
    rr3 = jnp.zeros((B3, 2, H3, W3, 1), dtype=jnp.float32)
    loss3 = jax.block_until_ready(class_loss(gt3, cp3, rr3, tile_n=128))
    ref3 = _reference(gt3, cp3, rr3)
    assert jnp.allclose(loss3, ref3, rtol=1e-5, atol=1e-5), (loss3, ref3)

    # 4) bf16 inputs (halved HBM traffic; kernel accumulates in f32).
    cp4 = class_pred.astype(jnp.bfloat16)
    gt4 = pixel_radar_map_gt.astype(jnp.bfloat16)
    loss4 = jax.block_until_ready(class_loss(gt4, cp4, raw_radars))
    ref4 = _reference(gt4, cp4, raw_radars)
    assert jnp.allclose(loss4, ref4, rtol=1e-5, atol=1e-5), (loss4, ref4)

    print("KERNEL_OK")
</pallas_src>

<mosaic_0001>
module attributes {stable_mosaic.version = 11 : i64} {
  func.func @_class_loss_kernel(%arg0: i32, %arg1: i32, %arg2: i32, %arg3: memref<1x4x256xf32, #tpu.memory_space<vmem>>, %arg4: memref<1x4x256xf32, #tpu.memory_space<vmem>>, %arg5: memref<1x1x1xf32, #tpu.memory_space<vmem>>, %arg6: memref<1x256xf32, #tpu.memory_space<vmem>>) attributes {dimension_semantics = [#tpu.dimension_semantics<parallel>, #tpu.dimension_semantics<parallel>, #tpu.dimension_semantics<arbitrary>], iteration_bounds = array<i64: 2, 1, 1>, scalar_prefetch = 0 : i64, scratch_operands = 1 : i64, tpu.core_type = #tpu.core_type<tc>, window_params = [{transform_indices = @transform_0, window_bounds = array<i64: 1, 4, 256>}, {transform_indices = @transform_1, window_bounds = array<i64: 1, 4, 256>}, {transform_indices = @transform_2, window_bounds = array<i64: 1, 1, 1>}]} {
    %c0_i32 = arith.constant 0 : i32
    %0 = arith.cmpi eq, %arg2, %c0_i32 : i32
    %1 = arith.extui %0 : i1 to i32
    %c0_i32_0 = arith.constant 0 : i32
    %2 = arith.cmpi ne, %1, %c0_i32_0 : i32
    scf.if %2 {
      %cst_15 = arith.constant 0.000000e+00 : f32
      %28 = vector.broadcast %cst_15 : f32 to vector<1x256xf32>
      %c0_16 = arith.constant 0 : index
      %c0_17 = arith.constant 0 : index
      %29 = vector.load %arg6[%c0_16, %c0_17] : memref<1x256xf32, #tpu.memory_space<vmem>>, vector<1x256xf32>
      tpu.vector_store %arg6[%c0_16, %c0_17], %28 {strides = array<i32>} : memref<1x256xf32, #tpu.memory_space<vmem>>, vector<1x256xf32>,
    } else {
    }
    %c0 = arith.constant 0 : index
    %c0_1 = arith.constant 0 : index
    %c0_2 = arith.constant 0 : index
    %3 = vector.load %arg4[%c0, %c0_1, %c0_2] : memref<1x4x256xf32, #tpu.memory_space<vmem>>, vector<1x4x256xf32>
    %4 = vector.shape_cast %3 : vector<1x4x256xf32> to vector<4x256xf32>
    %c0_3 = arith.constant 0 : index
    %c0_4 = arith.constant 0 : index
    %c0_5 = arith.constant 0 : index
    %5 = vector.load %arg3[%c0_3, %c0_4, %c0_5] : memref<1x4x256xf32, #tpu.memory_space<vmem>>, vector<1x4x256xf32>
    %6 = vector.shape_cast %5 : vector<1x4x256xf32> to vector<4x256xf32>
    %cst = arith.constant dense<0xFF800000> : vector<256xf32>
    %7 = vector.multi_reduction <maximumf>, %4, %cst [0] : vector<4x256xf32> to vector<256xf32>
    %8 = vector.shape_cast %7 : vector<256xf32> to vector<1x256xf32>
    %9 = vector.broadcast %8 : vector<1x256xf32> to vector<4x256xf32>
    %10 = arith.subf %4, %9 : vector<4x256xf32>
    %11 = math.exp %10 : vector<4x256xf32>
    %cst_6 = arith.constant dense<0.000000e+00> : vector<256xf32>
    %12 = vector.multi_reduction <add>, %11, %cst_6 [0] : vector<4x256xf32> to vector<256xf32>
    %13 = vector.shape_cast %12 : vector<256xf32> to vector<1x256xf32>
    %14 = math.log %13 : vector<1x256xf32>
    %cst_7 = arith.constant dense<0.000000e+00> : vector<256xf32>
    %15 = vector.multi_reduction <add>, %6, %cst_7 [0] : vector<4x256xf32> to vector<256xf32>
    %16 = vector.shape_cast %15 : vector<256xf32> to vector<1x256xf32>
    %17 = arith.mulf %6, %10 : vector<4x256xf32>
    %cst_8 = arith.constant dense<0.000000e+00> : vector<256xf32>
    %18 = vector.multi_reduction <add>, %17, %cst_8 [0] : vector<4x256xf32> to vector<256xf32>
    %19 = vector.shape_cast %18 : vector<256xf32> to vector<1x256xf32>
    %20 = arith.mulf %16, %14 : vector<1x256xf32>
    %21 = arith.subf %20, %19 : vector<1x256xf32>
    %c0_9 = arith.constant 0 : index
    %c0_10 = arith.constant 0 : index
    %22 = vector.load %arg6[%c0_9, %c0_10] : memref<1x256xf32, #tpu.memory_space<vmem>>, vector<1x256xf32>
    %23 = arith.addf %22, %21 : vector<1x256xf32>
    %c0_11 = arith.constant 0 : index
    %c0_12 = arith.constant 0 : index
    %24 = vector.load %arg6[%c0_11, %c0_12] : memref<1x256xf32, #tpu.memory_space<vmem>>, vector<1x256xf32>
    tpu.vector_store %arg6[%c0_11, %c0_12], %23 {strides = array<i32>} : memref<1x256xf32, #tpu.memory_space<vmem>>, vector<1x256xf32>,
    %c0_i32_13 = arith.constant 0 : i32
    %25 = arith.cmpi eq, %arg2, %c0_i32_13 : i32
    %26 = arith.extui %25 : i1 to i32
    %c0_i32_14 = arith.constant 0 : i32
    %27 = arith.cmpi ne, %26, %c0_i32_14 : i32
    scf.if %27 {
      %c0_15 = arith.constant 0 : index
      %c0_16 = arith.constant 0 : index
      %28 = vector.load %arg6[%c0_15, %c0_16] : memref<1x256xf32, #tpu.memory_space<vmem>>, vector<1x256xf32>
      %cst_17 = arith.constant dense<0.000000e+00> : vector<1xf32>
      %29 = vector.multi_reduction <add>, %28, %cst_17 [1] : vector<1x256xf32> to vector<1xf32>
      %30 = vector.shape_cast %29 : vector<1xf32> to vector<1x1xf32>
      %cst_18 = arith.constant 3.906250e-03 : f32
      %31 = vector.broadcast %cst_18 : f32 to vector<1x1xf32>
      %32 = arith.mulf %30, %31 : vector<1x1xf32>
      %33 = vector.shape_cast %32 : vector<1x1xf32> to vector<1x1x1xf32>
      %c0_19 = arith.constant 0 : index
      %c0_20 = arith.constant 0 : index
      %c0_21 = arith.constant 0 : index
      %34 = vector.load %arg5[%c0_19, %c0_20, %c0_21] : memref<1x1x1xf32, #tpu.memory_space<vmem>>, vector<1x1x1xf32>
      tpu.vector_store %arg5[%c0_19, %c0_20, %c0_21], %33 {strides = array<i32>} : memref<1x1x1xf32, #tpu.memory_space<vmem>>, vector<1x1x1xf32>,
    } else {
    }
    return
  }
  func.func @transform_0(%arg0: i32, %arg1: i32, %arg2: i32) -> (i32, i32, i32) {
    %c1_i32 = arith.constant 1 : i32
    %0 = arith.muli %arg1, %c1_i32 : i32
    %1 = arith.addi %0, %arg2 : i32
    %c0_i32 = arith.constant 0 : i32
    %2 = arith.minsi %1, %c0_i32 : i32
    %c0_i32_0 = arith.constant 0 : i32
    %c0_i32_1 = arith.constant 0 : i32
    return %arg0, %c0_i32_0, %2 : i32, i32, i32
  }
  func.func @transform_1(%arg0: i32, %arg1: i32, %arg2: i32) -> (i32, i32, i32) {
    %c1_i32 = arith.constant 1 : i32
    %0 = arith.muli %arg1, %c1_i32 : i32
    %1 = arith.addi %0, %arg2 : i32
    %c0_i32 = arith.constant 0 : i32
    %2 = arith.minsi %1, %c0_i32 : i32
    %c0_i32_0 = arith.constant 0 : i32
    %c0_i32_1 = arith.constant 0 : i32
    return %arg0, %c0_i32_0, %2 : i32, i32, i32
  }
  func.func @transform_2(%arg0: i32, %arg1: i32, %arg2: i32) -> (i32, i32, i32) {
    %c0_i32 = arith.constant 0 : i32
    %c0_i32_0 = arith.constant 0 : i32
    return %arg0, %arg1, %c0_i32 : i32, i32, i32
  }
}

</mosaic_0001>

<bundles_post_ra>
// kernel: tpu_custom_call.1
= control target key start
LH: loop header
LB: loop body
LE: loop exit
PB: predicated region body
PF: predicated region fallthrough
CT: control target
= control target key end

     0   :  { %7 = vsyncpa [#allocation4], 0  ;;  %s926_s0 = inlined_call_operand.hbm [shape: f32[2,4,256], index: 0, kind: input, shape index: {}]   ;;  %s927_s1 = inlined_call_operand.hbm [shape: f32[2,4,256], index: 1, kind: input, shape index: {}]   ;;  %s928_s2 = inlined_call_operand.vmem [shape: f32[2,1,1], index: 2, kind: output, shape index: {}]  }
   0x1   :  { %9 = vsyncpa [#allocation4 + $0x1], 0 }
   0x2   :  { %10 = vsyncpa [#allocation6], 0 }
   0x3   :  { %12 = vsyncpa [#allocation6 + $0x1], 0  ;;  %s733_s9 = smov 0   ;;  %s735_s10 = smov 0  }
   0x4   :  { %s737_s11 = smov 0   ;;  %s739_s12 = smov 0  }
   0x5   :  { %s741_s13 = smov 0   ;;  %s743_s14 = smov 0  }
   0x6 LB: > { %s511_s15 = sadd.s32 4294967295, %s712_s14   ;;  %s37_s16 = sadd.s32 1, %s708_s13  ;;  %s712_s14 = sphi %s743_s14, %s18_s14   ;;  %s708_s13 = sphi %s741_s13, %s944_s13   ;;  %s704_s12 = sphi %s739_s12, %s943_s12   ;;  %s700_s11 = sphi %s737_s11, %s942_s11   ;;  %s696_s10 = sphi %s735_s10, %s941_s10   ;;  %s692_s9 = sphi %s733_s9, %s940_s9  }
   0x7   : > { %p39_p0 = scmp.ge.s32.totalorder %s37_s16, 2  ;;  %s52_s17 = sadd.s32 1, %s700_s11 }
   0x8   : > { %p59_p1 = scmp.ne.s32.totalorder %s700_s11, %s696_s10  ;;  %p60_p2 = scmp.eq.s32.totalorder %s712_s14, 0 }
   0x9   : > { %s946_s16 = smov (%p39_p0, %s37_s16), 0  ;;  %p65_p4 = scmp.ne.s32.totalorder %s696_s10, %s692_s9 }
   0xa   : > { %p769_p3 = por %p60_p2, %p59_p1  ;;  %s47_s19 = ssub.s32 %s708_s13, %s946_s16 }
   0xb   : > { %p66_p5 = scmp.eq.s32.totalorder %s511_s15, 0  ;;  %p50_p6 = scmp.eq.s32.totalorder %s47_s19, 0 }
   0xc   : > { %p539_p8 = scmp.lt.s32.totalorder %s712_s14, 2  ;;  %s785_s22 = sand.u32 1, %s700_s11  }
   0xd   : > { %p776_p7 = por %p66_p5, %p65_p4  ;;  %s526_s23 = sshll.u32 %s708_s13, 7 }
   0xe   : > { %s782_s21 = scalar_select %p50_p6, %s700_s11, %s52_s17  }
   0xf   : > { %s931_s20 = scalar_select %p776_p7, 1, 0 }
  0x10   : > { %s515_s24 = sshll.u32 %s785_s22, 3  ;;  %s794_s27 = scalar_lea.hbm %s926_s0, %s526_s23 }
  0x11   : > { %s155_s28 = scalar_lea.vmem [#allocation3], %s515_s24  ;;  %p800_p9 = pnand %p539_p8, %p769_p3 }
  0x12   : > { %s168_s29 = sshll.u32 %s155_s28, 4  ;;  %s152_s3 = scalar_lea.sflag [#allocation4], %s785_s22  ;;  %s804_s29 = int_to_ptr.vmem [resolvable:$true] %s168_s29 }
  0x13   : > { %s598_s4 = scalar_lea.hbm %s794_s27, 128  ;;  %p600_p13 = pneg %p800_p9 }
  0x14   : > { %p599_p12 = scmp.ne.s32.totalorder %s794_s27, %s598_s4  ;;  %s603_s7 = scalar_lea.hbm %s926_s0, 256 }
  0x15   : > { %p604_p2 = scmp.lt.u32.totalorder %s794_s27, %s926_s0  ;;  %p605_p3 = scmp.lt.u32.totalorder %s603_s7, %s598_s4 }
  0x16   : > { %p601_p0 = pnand %p600_p13, %p599_p12  ;;  %p607_p5 = scmp.lt.u32.totalorder %s598_s4, %s794_s27 }
  0x17   : > { %p606_p4 = por %p605_p3, %p604_p2 }
  0x18   : > { %p602_p1 = pneg %p601_p0 }
  0x19   : > { %p608_p6 = por %p607_p5, %p606_p4 }
  0x1b   : > { %p609_p8 = pnand %p608_p6, %p602_p1 }
  0x1d   : > { %612 = shalt.err (!%p609_p8)
}
  0x1e   : > { %s613_s15 = scalar_lea.vmem %s804_s29, 128  ;;  %s714_s17 = smov [#allocation3]  }
  0x1f   : > { %p614_p12 = scmp.ne.s32.totalorder %s804_s29, %s613_s15  ;;  %s618_s18 = sshll.u32 %s714_s17, 4  ;;  %s619_s18 = int_to_ptr.vmem [resolvable:$false] %s618_s18 }
  0x20   : > { %s620_s19 = scalar_lea.vmem %s619_s18, 256  ;;  %p621_p11 = scmp.lt.s32.totalorder %s804_s29, %s619_s18 }
  0x21   : > { %p616_p0 = pnand %p614_p12, %p600_p13  ;;  %p622_p2 = scmp.lt.s32.totalorder %s620_s19, %s613_s15 }
  0x23   : > { %p617_p10 = pneg %p616_p0  ;;  %p623_p3 = por %p622_p2, %p621_p11 }
  0x25   : > { %p624_p4 = pnand %p623_p3, %p617_p10 }
  0x27   : > { %627 = shalt.err (!%p624_p4)
}
  0x28   : > { %535 = dma.hbm_to_vmem [thread:$0]  (!%p800_p9), %s794_s27, 128, %s804_s29, %s152_s3  }
  0x29   : > { %p933_p1 = scmp.lt.s32.totalorder %s712_s14, 3  ;;  %p934_p5 = scmp.ge.s32.totalorder %s712_s14, 1 }
  0x2a   : > { %s847_s4 = scalar_lea.hbm %s927_s1, %s526_s23  ;;  %s179_s5 = scalar_lea.vmem [#allocation5], %s515_s24 }
  0x2b   : > { %p838_p6 = pnand %p934_p5, %p933_p1  ;;  %s192_s6 = sshll.u32 %s179_s5, 4  ;;  %s193_s6 = int_to_ptr.vmem [resolvable:$true] %s192_s6 }
  0x2c   : > { %s176_s27 = scalar_lea.sflag [#allocation6], %s785_s22  ;;  %s628_s29 = scalar_lea.hbm %s847_s4, 128 }
  0x2d   : > { %s935_s25 = scalar_select %p838_p6, 1, 0 }
  0x2e   : > { %p629_p10 = scmp.ne.s32.totalorder %s847_s4, %s628_s29  ;;  %s633_s23 = scalar_lea.hbm %s927_s1, 256 }
  0x2f   : > { %p634_p12 = scmp.lt.u32.totalorder %s847_s4, %s927_s1  ;;  %p635_p0 = scmp.lt.u32.totalorder %s633_s23, %s628_s29 }
  0x30   : > { %p631_p11 = pnand %p629_p10, %p600_p13  ;;  %p637_p3 = scmp.lt.u32.totalorder %s628_s29, %s847_s4 }
  0x31   : > { %p636_p2 = por %p635_p0, %p634_p12 }
  0x32   : > { %p632_p8 = pneg %p631_p11 }
  0x33   : > { %p638_p4 = por %p637_p3, %p636_p2 }
  0x35   : > { %p639_p1 = pnand %p638_p4, %p632_p8 }
  0x37   : > { %642 = shalt.err (!%p639_p1)
}
  0x38   : > { %s643_s22 = scalar_lea.vmem %s193_s6, 128  ;;  %s715_s24 = smov [#allocation5]  }
  0x39   : > { %p644_p5 = scmp.ne.s32.totalorder %s193_s6, %s643_s22  ;;  %s648_s15 = sshll.u32 %s715_s24, 4  ;;  %s649_s15 = int_to_ptr.vmem [resolvable:$false] %s648_s15 }
  0x3a   : > { %s650_s17 = scalar_lea.vmem %s649_s15, 256  ;;  %p651_p7 = scmp.lt.s32.totalorder %s193_s6, %s649_s15 }
  0x3b   : > { %p646_p10 = pnand %p644_p5, %p600_p13  ;;  %p652_p6 = scmp.lt.s32.totalorder %s650_s17, %s643_s22 }
  0x3d   : > { %p647_p11 = pneg %p646_p10  ;;  %p653_p0 = por %p652_p6, %p651_p7 }
  0x3f   : > { %p654_p12 = pnand %p653_p0, %p647_p11 }
  0x41   : > { %657 = shalt.err (!%p654_p12)
}
  0x42   : > { %538 = dma.hbm_to_vmem [thread:$0]  (!%p800_p9), %s847_s4, 128, %s193_s6, %s176_s27  }
  0x43   : > { %p936_p8 = scmp.ne.s32.totalorder %s935_s25, 0 }
  0x44   : > { %s203_s18 = sand.u32 (!%p936_p8), 1, %s696_s10   ;;  %p937_p13 = scmp.ne.s32.totalorder (!%p936_p8), %s931_s20, 0 }
  0x45   : > { %201 = sbr.rel (%p936_p8) target bundleno = 310 (0x136), region = 28  ;;  %s522_s19 = sshll.u32 (!%p936_p8), %s203_s18, 3 }
  0x46   : > { %s204_s26 = scalar_lea.sflag (!%p936_p8), [#allocation4], %s203_s18  ;;  %s874_s28 = scalar_lea.vmem (!%p936_p8), [#allocation3], %s522_s19 }
  0x4c   : > { %683 = dma.done.wait (%p937_p13), %s204_s26, 128  }
  0x4d   : > { %685 = vsyncadd (%p937_p13), %s204_s26, 4294967168  ;;  %s213_s5 = scalar_lea.sflag [#allocation6], %s203_s18  ;;  %s216_s30 = scalar_lea.vmem [#allocation5], %s522_s19 }
  0x4e   : > { %687 = dma.done.wait (%p937_p13), %s213_s5, 128  }
  0x4f   : > { %689 = vsyncadd (%p937_p13), %s213_s5, 4294967168  ;;  %v261_v0 = vlaneseq  ;;  %v716_v2 = vmov 0.0   ;;  %vm271_vm1 = vcmask 1043456   ;;  %v266_v3 = vld [vmem:[%s216_s30] sm:$0xff]  ;;  %v267_v22 = vld [vmem:[%s874_s28] sm:$0xff]  ;;  %vm393_vm2 = vcmask 1040384  }
  0x50   : > { %v269_v4 = vcombine.high %v266_v3, %v266_v3  ;;  %v272_v5 = vsel %vm271_vm1, %v266_v3, -inf  ;;  %v315_v24 = vcombine.high %v267_v22, %v267_v22  ;;  %v317_v26 = vsel %vm271_vm1, %v267_v22, 0.0  ;;  %p251_p7 = scmp.lt.s32.totalorder %s704_s12, 1 }
  0x51   : > { %vm885_vm0 = vcmp.lt.s32.totalorder %v261_v0, 256  ;;  %v273_v6 = vrot.slane %v272_v5, 4  ;;  %v318_v34 = vrot.slane %v317_v26, 4  ;;  %vm400_vm3 = vcmask 0  }
  0x52   : > { %265 = vst.msk [vmem:[#allocation2] sm:$0x3] %vm885_vm0, %v716_v2  ;;  %v279_v7 = vsel %vm271_vm1, %v269_v4, -inf  ;;  %v324_v31 = vsel %vm271_vm1, %v315_v24, 0.0  ;;  %s948_s12 = smov (!%p251_p7, %s704_s12), 1 }
  0x53   : > { %v274_v8 = vmax.f32 %v272_v5, %v273_v6  ;;  %v280_v9 = vrot.slane %v279_v7, 4  ;;  %v325_v38 = vrot.slane %v324_v31, 4  ;;  %v319_v42 = vadd.f32 %v318_v34, %v317_v26  ;;  %s256_s4 = scalar_lea.vmem %s928_s2, %s948_s12 }
  0x54   : > { %v717_v5 = vmov 1966171168  }
  0x55   : > { %v275_v10 = vrot.slane %v274_v8, 2  ;;  %v281_v11 = vmax.f32 %v279_v7, %v280_v9  ;;  %v326_v46 = vadd.f32 %v325_v38, %v324_v31  ;;  %v320_v50 = vrot.slane %v319_v42, 2 }
  0x56   : > { %v358_v6 = vunpack.c.l.s4 %v717_v5 }
  0x57   : > { %v276_v12 = vmax.f32 %v274_v8, %v275_v10  ;;  %v282_v13 = vrot.slane %v281_v11, 2  ;;  %v327_v54 = vrot.slane %v326_v46, 2  ;;  %v321_v57 = vadd.f32 %v320_v50, %v319_v42 }
  0x59   : > { %v277_v14 = vrot.slane %v276_v12, 1  ;;  %v283_v15 = vmax.f32 %v281_v11, %v282_v13  ;;  %v328_v59 = vadd.f32 %v327_v54, %v326_v46  ;;  %v322_v61 = vrot.slane %v321_v57, 1 }
  0x5b   : > { %v278_v16 = vmax.f32 %v276_v12, %v277_v14  ;;  %v284_v17 = vrot.slane %v283_v15, 1  ;;  %v329_v63 = vrot.slane %v328_v59, 1  ;;  %v361_v12 = vshrl.u32 %v261_v0, 7 }
  0x5d   : > { %v285_v18 = vmax.f32 %v283_v15, %v284_v17  ;;  %v330_v9 = vadd.f32 %v329_v63, %v328_v59  ;;  %v385_v26 = vsub.s32 0, %v361_v12  ;;  %v389_v0 = vsub.s32 1, %v361_v12 }
  0x5f   : > { %v288_v19 = vcombine.low %v278_v16, %v285_v18  ;;  %v359_v16 = vunpack.c.0.s8 %v358_v6 }
  0x61   : > { %v290_v20 = vsub.f32 %v266_v3, %v288_v19  ;;  %v323_v3 = vadd.f32 %v322_v61, %v321_v57 }
  0x63   : > { %v291_v21 = vmul.f32 1.442695, %v290_v20  ;;  %v331_v23 = vmul.f32 %v290_v20, %v267_v22  ;;  %v362_v20 = vsub.s32 %v359_v16, %v361_v12 }
  0x65   : > { %592 = vpow2.f32 %v291_v21  ;;  %v333_v27 = vcombine.high %v331_v23, %v331_v23  ;;  %v335_v32 = vsel %vm271_vm1, %v331_v23, 0.0  ;;  %v353_v23 = vld [vmem:[#allocation2] sm:$0x3] }
  0x66   : > { %v336_v39 = vrot.slane %v335_v32, 4 }
  0x67   : > { %v342_v37 = vsel %vm271_vm1, %v333_v27, 0.0 }
  0x68   : > { %v343_v43 = vrot.slane %v342_v37, 4  ;;  %v337_v47 = vadd.f32 %v336_v39, %v335_v32 }
  0x6a   : > { %v344_v51 = vadd.f32 %v343_v43, %v342_v37  ;;  %v338_v55 = vrot.slane %v337_v47, 2 }
  0x6c   : > { %v345_v58 = vrot.slane %v344_v51, 2  ;;  %v339_v60 = vadd.f32 %v338_v55, %v337_v47 }
  0x6e   : > { %v346_v62 = vadd.f32 %v345_v58, %v344_v51  ;;  %v340_v2 = vrot.slane %v339_v60, 1 }
  0x6f   : > { %v593_v25 = vpop.eup %592 }
  0x70   : > { %v294_v28 = vcombine.high %v593_v25, %v593_v25  ;;  %v296_v29 = vsel %vm271_vm1, %v593_v25, 0.0  ;;  %v347_v4 = vrot.slane %v346_v62, 1  ;;  %v341_v10 = vadd.f32 %v340_v2, %v339_v60 }
  0x71   : > { %v297_v30 = vrot.slane %v296_v29, 4 }
  0x72   : > { %v303_v33 = vsel %vm271_vm1, %v294_v28, 0.0  ;;  %v348_v14 = vadd.f32 %v347_v4, %v346_v62 }
  0x73   : > { %v298_v35 = vadd.f32 %v297_v30, %v296_v29  ;;  %v304_v36 = vrot.slane %v303_v33, 4 }
  0x75   : > { %v299_v40 = vrot.slane %v298_v35, 2  ;;  %v305_v41 = vadd.f32 %v304_v36, %v303_v33 }
  0x77   : > { %v300_v44 = vadd.f32 %v299_v40, %v298_v35  ;;  %v306_v45 = vrot.slane %v305_v41, 2 }
  0x79   : > { %v301_v48 = vrot.slane %v300_v44, 1  ;;  %v307_v49 = vadd.f32 %v306_v45, %v305_v41 }
  0x7b   : > { %v302_v52 = vadd.f32 %v301_v48, %v300_v44  ;;  %v308_v53 = vrot.slane %v307_v49, 1 }
  0x7d   : > { %v309_v56 = vadd.f32 %v308_v53, %v307_v49  ;;  %594 = vlog2.f32 %v302_v52 }
  0x7f   : > { %596 = vlog2.f32 %v309_v56 }
  0x87   : > { %v595_v7 = vpop.eup %594 }
  0x88   : > { %v311_v8 = vmul.f32 0.6931472, %v595_v7 }
  0x89   : > { %v597_v11 = vpop.eup %596 }
  0x8a   : > { %v313_v13 = vmul.f32 0.6931472, %v597_v11  ;;  %v349_v15 = vmul.f32 %v323_v3, %v311_v8 }
  0x8c   : > { %v350_v17 = vmul.f32 %v330_v9, %v313_v13  ;;  %v351_v18 = vsub.f32 %v349_v15, %v341_v10 }
  0x8e   : > { %v352_v19 = vsub.f32 %v350_v17, %v348_v14 }
  0x90   : > { %v356_v21 = vcombine.low %v351_v18, %v352_v19 }
  0x92   : > { %v363_v22 = vrot.slane %v356_v21, %v362_v20 }
  0x94   : > { %v370_v24 = vrot.slane %v363_v22, %v362_v20 }
  0x96   : > { %v372_v25 = vadd.f32 %v370_v24, %v353_v23 }
  0x98   : > { %377 = vst.msk [vmem:[#allocation2] sm:$0x3] %vm885_vm0, %v372_v25 }
  0x9f   : > { %v381_v27 = vld [vmem:[#allocation2] sm:$0x3] }
  0xa0   : > { %v386_v28 = vrot.slane %v381_v27, %v385_v26  ;;  %v390_v29 = vrot.slane %v381_v27, %v389_v0 }
  0xa2   : > { %v394_v30 = vsel %vm393_vm2, %v386_v28, 0.0  ;;  %v395_v31 = vsel %vm393_vm2, %v390_v29, 0.0 }
  0xa3   : > { %v396_v32 = vadd.f32 %v395_v31, %v394_v30 }
  0xa5   : > { %397 = vadd.xlane.f32.xlu0 %v396_v32 }
 0x132   : > { %v398_v33 = vpop.xlane.xlu0 %397 }
 0x133   : > { %v399_v1 = vmul.f32 0.00390625, %v398_v33 }
 0x135   : > { %401 = vst.msk [vmem:[%s256_s4] sm:$0x1] %vm400_vm3, %v399_v1 }
 0x136 PF: > { %s18_s14 = sadd.s32 1, %s712_s14   ;;  %s940_s9 = smov %s696_s10 }
 0x137   : > { %p15_p9 = scmp.ge.s32.totalorder %s18_s14, 4   ;;  %s941_s10 = smov %s700_s11 }
 0x138   : > { %s942_s11 = smov %s782_s21  ;;  %s943_s12 = smov %s708_s13 }
 0x139   : > { %s944_s13 = smov %s946_s16  ;;  %17 = sbr.rel (!%p15_p9) target bundleno = 6 (0x6), region = 89 }
 0x140   :  { %425 = vsyncpa [#allocation4], 1 }
 0x141   :  { %427 = vsyncpa [#allocation4 + $0x1], 1 }
 0x142   :  { %428 = vsyncpa [#allocation6], 1 }
 0x143   :  { %430 = vsyncpa [#allocation6 + $0x1], 1 }

</bundles_post_ra>
